<compile_context>
chip_gen: v6e
topology: v6e:2x2x1
jax: 0.10.0
libtpu: 0.0.40
codegen_flags: <defaults>
</compile_context>

<pallas_src>
import jax
import jax.numpy as jnp
from jax.experimental import pallas as pl
from jax.experimental.pallas import tpu as pltpu


def _make_dynamic_fc_kernel(degree, knots, isbias, act, islastlayer):
    """Build a Pallas kernel closure with static spline / layer config."""
    d = degree + 1 + len(knots)

    def kernel(x_ref, w_ref, out_ref):
        # x_ref:   (TB, 1+ind)  treatment in column 0, features after.
        # w_ref:   (K, outd)    K = ind*d (+ d if isbias); pre-flattened weight
        #                       (bias rows appended when isbias=1).
        # out_ref: (TB, 1+outd) if not islastlayer else (TB, outd).
        xt = x_ref[:, :1]                     # (TB, 1) treatment
        xf = x_ref[:, 1:]                     # (TB, ind) features

        # Truncated-power basis columns (mirrors Truncated_power.forward).
        cols = []
        for j in range(d):
            if j == 0:
                cols.append(jnp.ones_like(xt))
            elif j <= degree:
                cols.append(xt ** j)
            elif degree == 1:
                cols.append(jnp.maximum(xt - knots[j - degree], 0.0))
            else:
                cols.append(jnp.maximum(xt - knots[j - degree - 1], 0.0) ** degree)

        # z = [ xf*basis_j blocks | basis columns (bias) ]  -> (TB, K)
        z_blocks = [xf * cols[j] for j in range(d)]          # each (TB, ind)
        if isbias:
            z_blocks = z_blocks + cols                       # + d columns of basis
        z = jnp.concatenate(z_blocks, axis=1)                # (TB, K)

        # Single fused MXU matmul: (TB, K) @ (K, outd) -> (TB, outd), f32 acc.
        acc = jnp.dot(z, w_ref[...], preferred_element_type=jnp.float32)

        if act == "relu":
            acc = jnp.maximum(acc, 0.0)
        elif act == "tanh":
            acc = jnp.tanh(acc)
        elif act == "sigmoid":
            acc = jax.nn.sigmoid(acc)

        if islastlayer:
            out_ref[...] = acc.astype(out_ref.dtype)
        else:
            # Prepend the treatment column inside the kernel (one fused store).
            out_ref[...] = jnp.concatenate(
                [xt.astype(out_ref.dtype), acc.astype(out_ref.dtype)], axis=1)

    return kernel


def prepare_dynamic_fc_params(weight, bias, degree, knots, isbias=1):
    """One-time parameter re-layout (hoisted out of the per-call forward path).

    Returns W_flat of shape (ind*d [+ d], outd) whose rows match the column
    order of z built inside the kernel:
      row j*ind + i  -> weight[i, :, j]
      row ind*d + j  -> bias[:, j]        (only when isbias)
    """
    ind, outd, d = weight.shape
    assert d == degree + 1 + len(knots)
    w_jio = jnp.transpose(weight, (2, 0, 1)).reshape(d * ind, outd)  # (d*ind, outd)
    if isbias:
        b_rows = jnp.transpose(bias, (1, 0))                         # (d, outd)
        w_flat = jnp.concatenate([w_jio, b_rows], axis=0)            # (d*ind+d, outd)
    else:
        w_flat = w_jio
    return w_flat


def _pick_batch_tile(B):
    """Largest convenient batch tile; whole batch if small."""
    if B <= 1024:
        return B
    for tb in (1024, 512, 256, 128, 64, 32, 16, 8):
        if B % tb == 0:
            return tb
    return B


def dynamic_fc_forward(x, w_flat, degree, knots,
                       act="relu", isbias=1, islastlayer=0):
    """Forward pass. `w_flat` must come from prepare_dynamic_fc_params()."""
    B, one_plus_ind = x.shape
    K, outd = w_flat.shape
    d = degree + 1 + len(knots)
    ind = one_plus_ind - 1
    assert K == ind * d + (d if isbias else 0)

    out_cols = outd if islastlayer else 1 + outd
    TB = _pick_batch_tile(B)
    grid = (pl.cdiv(B, TB),)

    kernel = _make_dynamic_fc_kernel(
        degree, tuple(float(k) for k in knots), bool(isbias), act,
        bool(islastlayer))

    out = pl.pallas_call(
        kernel,
        out_shape=jax.ShapeDtypeStruct((B, out_cols), x.dtype),
        grid_spec=pltpu.PrefetchScalarGridSpec(
            num_scalar_prefetch=0,
            grid=grid,
            in_specs=[
                pl.BlockSpec((TB, one_plus_ind), lambda i: (i, 0)),  # x batch tile
                pl.BlockSpec((K, outd), lambda i: (0, 0)),           # full weights
            ],
            out_specs=pl.BlockSpec((TB, out_cols), lambda i: (i, 0)),
        ),
        compiler_params=pltpu.CompilerParams(
            dimension_semantics=("parallel",)),
    )(x, w_flat)
    return out


def dynamic_fc_reference(x, weight, bias, degree, knots,
                         act="relu", isbias=1, islastlayer=0):
    """Pure-JAX reference mirroring the torch forward, for verification."""
    xt = x[:, 0]
    xf = x[:, 1:]
    d = degree + 1 + len(knots)
    cols = []
    for j in range(d):
        if j == 0:
            cols.append(jnp.ones_like(xt))
        elif j <= degree:
            cols.append(xt ** j)
        elif degree == 1:
            cols.append(jnp.maximum(xt - knots[j - degree], 0.0))
        else:
            cols.append(jnp.maximum(xt - knots[j - degree - 1], 0.0) ** degree)
    basis = jnp.stack(cols, axis=1)                          # (B, d)
    xfw = jnp.einsum("bi,iod->bod", xf, weight)              # (B, outd, d)
    out = jnp.sum(xfw * basis[:, None, :], axis=2)           # (B, outd)
    if isbias:
        out = out + basis @ bias.T
    if act == "relu":
        out = jnp.maximum(out, 0.0)
    elif act == "tanh":
        out = jnp.tanh(out)
    elif act == "sigmoid":
        out = jax.nn.sigmoid(out)
    if not islastlayer:
        out = jnp.concatenate([x[:, :1], out], axis=1)
    return out


if __name__ == "__main__":
    # Module config (matches Dynamic_FC(ind=6, outd=8, degree=2, knots=[1/3, 2/3])).
    ind, outd = 6, 8
    degree = 2
    knots = [1.0 / 3.0, 2.0 / 3.0]
    d = degree + 1 + len(knots)                 # 5
    B = 8

    key = jax.random.PRNGKey(0)
    kx, kw, kb = jax.random.split(key, 3)
    # torch.rand -> uniform [0, 1); treatment column assumed in [0, 1].
    x = jax.random.uniform(kx, (B, 1 + ind), dtype=jnp.float32)
    weight = jax.random.uniform(kw, (ind, outd, d), dtype=jnp.float32)
    bias = jax.random.uniform(kb, (outd, d), dtype=jnp.float32)

    # One-time parameter re-layout (not on the per-call forward path).
    w_flat = prepare_dynamic_fc_params(weight, bias, degree, knots, isbias=1)
    w_flat = jax.block_until_ready(w_flat)

    out = dynamic_fc_forward(x, w_flat, degree, knots,
                             act="relu", isbias=1, islastlayer=0)
    out = jax.block_until_ready(out)

    ref = dynamic_fc_reference(x, weight, bias, degree, knots,
                               act="relu", isbias=1, islastlayer=0)
    assert out.shape == (B, 1 + outd)
    assert jnp.allclose(out, ref, rtol=1e-5, atol=1e-5)
    print("KERNEL_OK")
</pallas_src>

<mosaic_0001>
module attributes {stable_mosaic.version = 11 : i64} {
  func.func @kernel(%arg0: i32, %arg1: memref<8x7xf32, #tpu.memory_space<vmem>>, %arg2: memref<35x8xf32, #tpu.memory_space<vmem>>, %arg3: memref<8x9xf32, #tpu.memory_space<vmem>>) attributes {dimension_semantics = [#tpu.dimension_semantics<parallel>], iteration_bounds = array<i64: 1>, scalar_prefetch = 0 : i64, scratch_operands = 0 : i64, tpu.core_type = #tpu.core_type<tc>, window_params = [{transform_indices = @transform_0, window_bounds = array<i64: 8, 7>}, {pipeline_mode = #tpu.pipeline_mode<synchronous>, transform_indices = @transform_1, window_bounds = array<i64: 35, 8>}, {transform_indices = @transform_2, window_bounds = array<i64: 8, 9>}]} {
    %c0 = arith.constant 0 : index
    %c0_0 = arith.constant 0 : index
    %0 = vector.load %arg1[%c0, %c0_0] : memref<8x7xf32, #tpu.memory_space<vmem>>, vector<8x1xf32>
    %c0_1 = arith.constant 0 : index
    %c1 = arith.constant 1 : index
    %1 = vector.load %arg1[%c0_1, %c1] : memref<8x7xf32, #tpu.memory_space<vmem>>, vector<8x6xf32>
    %cst = arith.constant 1.000000e+00 : f32
    %2 = vector.broadcast %cst : f32 to vector<8x1xf32>
    %3 = arith.mulf %0, %0 : vector<8x1xf32>
    %cst_2 = arith.constant 0.333333343 : f32
    %4 = vector.broadcast %cst_2 : f32 to vector<8x1xf32>
    %5 = arith.subf %0, %4 : vector<8x1xf32>
    %cst_3 = arith.constant 0.000000e+00 : f32
    %6 = vector.broadcast %cst_3 : f32 to vector<8x1xf32>
    %7 = arith.maximumf %5, %6 : vector<8x1xf32>
    %8 = arith.mulf %7, %7 : vector<8x1xf32>
    %cst_4 = arith.constant 0.666666686 : f32
    %9 = vector.broadcast %cst_4 : f32 to vector<8x1xf32>
    %10 = arith.subf %0, %9 : vector<8x1xf32>
    %cst_5 = arith.constant 0.000000e+00 : f32
    %11 = vector.broadcast %cst_5 : f32 to vector<8x1xf32>
    %12 = arith.maximumf %10, %11 : vector<8x1xf32>
    %13 = arith.mulf %12, %12 : vector<8x1xf32>
    %14 = vector.broadcast %2 : vector<8x1xf32> to vector<8x6xf32>
    %15 = arith.mulf %1, %14 : vector<8x6xf32>
    %16 = vector.broadcast %0 : vector<8x1xf32> to vector<8x6xf32>
    %17 = arith.mulf %1, %16 : vector<8x6xf32>
    %18 = vector.broadcast %3 : vector<8x1xf32> to vector<8x6xf32>
    %19 = arith.mulf %1, %18 : vector<8x6xf32>
    %20 = vector.broadcast %8 : vector<8x1xf32> to vector<8x6xf32>
    %21 = arith.mulf %1, %20 : vector<8x6xf32>
    %22 = vector.broadcast %13 : vector<8x1xf32> to vector<8x6xf32>
    %23 = arith.mulf %1, %22 : vector<8x6xf32>
    %24 = tpu.concatenate %15, %17, %19, %21, %23, %2, %0, %3, %8, %13 in 1 : vector<8x6xf32>, vector<8x6xf32>, vector<8x6xf32>, vector<8x6xf32>, vector<8x6xf32>, vector<8x1xf32>, vector<8x1xf32>, vector<8x1xf32>, vector<8x1xf32>, vector<8x1xf32> -> vector<8x35xf32>
    %c0_6 = arith.constant 0 : index
    %c0_7 = arith.constant 0 : index
    %25 = vector.load %arg2[%c0_6, %c0_7] : memref<35x8xf32, #tpu.memory_space<vmem>>, vector<35x8xf32>
    %cst_8 = arith.constant dense<0.000000e+00> : vector<8x8xf32>
    %26 = tpu.matmul %24, %25, %cst_8 {dimension_numbers = #tpu.dot_dimension_numbers<[1], [0], [0], [1], [0, 0, 1, 1], [], []>} : vector<8x35xf32>, vector<35x8xf32>, vector<8x8xf32> -> vector<8x8xf32>
    %cst_9 = arith.constant 0.000000e+00 : f32
    %27 = vector.broadcast %cst_9 : f32 to vector<8x8xf32>
    %28 = arith.maximumf %26, %27 : vector<8x8xf32>
    %29 = tpu.concatenate %0, %28 in 1 : vector<8x1xf32>, vector<8x8xf32> -> vector<8x9xf32>
    %c0_10 = arith.constant 0 : index
    %c0_11 = arith.constant 0 : index
    %30 = vector.load %arg3[%c0_10, %c0_11] : memref<8x9xf32, #tpu.memory_space<vmem>>, vector<8x9xf32>
    tpu.vector_store %arg3[%c0_10, %c0_11], %29 {strides = array<i32>} : memref<8x9xf32, #tpu.memory_space<vmem>>, vector<8x9xf32>,
    return
  }
  func.func @transform_0(%arg0: i32) -> (i32, i32) {
    %c0_i32 = arith.constant 0 : i32
    %c0_i32_0 = arith.constant 0 : i32
    return %arg0, %c0_i32 : i32, i32
  }
  func.func @transform_1(%arg0: i32) -> (i32, i32) {
    %c0_i32 = arith.constant 0 : i32
    %c0_i32_0 = arith.constant 0 : i32
    %c0_i32_1 = arith.constant 0 : i32
    return %c0_i32, %c0_i32_0 : i32, i32
  }
  func.func @transform_2(%arg0: i32) -> (i32, i32) {
    %c0_i32 = arith.constant 0 : i32
    %c0_i32_0 = arith.constant 0 : i32
    return %arg0, %c0_i32 : i32, i32
  }
}

</mosaic_0001>

<bundles_post_ra>
// kernel: tpu_custom_call.1
= control target key start
LH: loop header
LB: loop body
LE: loop exit
PB: predicated region body
PF: predicated region fallthrough
CT: control target
= control target key end

     0   :  { %s324_s0 = inlined_call_operand.vmem [shape: f32[8,7], index: 0, kind: input, shape index: {}]   ;;  %s325_s1 = inlined_call_operand.vmem [shape: f32[35,8], index: 1, kind: input, shape index: {}]   ;;  %s326_s2 = inlined_call_operand.hbm [shape: f32[8,9], index: 2, kind: output, shape index: {}]  }
   0x1   :  { %v292_v0 = vld [vmem:[%s324_s0] sm:$0xff] }
   0x2   :  { %7 = vsyncpa [#allocation3], 0  ;;  %v260_v1 = vmov 0   ;;  %v199_v2 = vadd.f32 -0.33333334, %v292_v0  ;;  %v13_v4 = vmul.f32 %v292_v0, %v292_v0  ;;  %s261_s0 = smov 127  }
   0x3   :  { %236 = vset.pattern.permute.xlu0 %v260_v1  ;;  %237 = vset.pattern.permute.xlu1 %v260_v1  ;;  %v200_v3 = vadd.f32 -0.6666667, %v292_v0  ;;  %v262_v9 = vmov 0.0   ;;  %v97_v10 = vld [vmem:[%s325_s1 + $0x20] sm:$0x7]  ;;  %vm102_vm0 = vcmask 1042432  }
   0x4   :  { %22 = vperm.xlu0 %236, %v292_v0   ;;  %v15_v5 = vmax.f32 %v199_v2, 0.0  ;;  %209 = vmatprep.subr.mxu0 %v262_v9  ;;  %v96_v12 = vld [vmem:[%s325_s1 + $0x18] sm:$0xff]  ;;  %v95_v14 = vld [vmem:[%s325_s1 + $0x10] sm:$0xff]  ;;  %s263_s17 = smov 5   ;;  %v94_v16 = vld [vmem:[%s325_s1 + $0x8] sm:$0xff]  ;;  %s264_s22 = smov 11  }
   0x5   :  { %v18_v6 = vmax.f32 %v200_v3, 0.0  ;;  %210 = vmatpush3.msk.msra.mxu0 %vm102_vm0, %v97_v10  ;;  %v93_v20 = vld [vmem:[%s325_s1] sm:$0xff]  ;;  %s265_s23 = smov 17   ;;  %vm266_vm1 = vmmov 0   ;;  %s267_s24 = smov 23   ;;  %vm75_vm2 = vcmask 48128  }
   0x6   :  { %v16_v7 = vmul.f32 %v15_v5, %v15_v5  ;;  %211 = vmatprep.subr.mxu0 %v262_v9  ;;  %219 = vmatprep.mubr.msk.f32.mxu0 %vm266_vm1, %v262_v9  ;;  %s268_s25 = smov 31   ;;  %s269_s26 = smov 32   ;;  %vm77_vm3 = vcmask 97280   ;;  %vm79_vm4 = vcmask 146432   ;;  %vm81_vm5 = vcmask 195584  }
   0x7   :  { %v19_v8 = vmul.f32 %v18_v6, %v18_v6  ;;  %212 = vmatpush3.msra.mxu0 %v96_v12  ;;  %s270_s27 = smov 33   ;;  %s271_s1 = smov 34   ;;  %vm83_vm6 = vcmask 244736   ;;  %vm85_vm7 = vcmask 252928   ;;  %vm87_vm8 = vcmask 261120  }
   0x8   :  { %28 = vperm.xlu0 %236, %v13_v4   ;;  %34 = vperm.xlu1 %237, %v16_v7   ;;  %vm89_vm9 = vcmask 269312   ;;  %vm91_vm10 = vcmask 277504   ;;  %vm98_vm11 = vcmask 285696   ;;  %s272_s28 = smov 1   ;;  %s273_s29 = smov [#allocation2]   ;;  %vm181_vm12 = vcmask 7168  }
   0x9   :  { %213 = vmatprep.subr.mxu0 %v262_v9  ;;  %s191_s30 = sshll.u32 %s273_s29, 4  ;;  %vm183_vm13 = vcmask 72704   ;;  %s192_s30 = int_to_ptr.vmem [resolvable:$true] %s191_s30 }
   0xa   :  { %214 = vmatpush3.msra.mxu0 %v95_v14  ;;  %s238_s3 = scalar_lea.vmem %s192_s30, 128  ;;  %p243_p1 = scmp.lt.s32.totalorder %s192_s30, %s192_s30 }
   0xb   :  { %215 = vmatprep.subr.mxu0 %v262_v9  ;;  %p239_p0 = scmp.ne.s32.totalorder %s192_s30, %s238_s3  ;;  %p244_p2 = scmp.lt.s32.totalorder %s238_s3, %s238_s3 }
   0xc   :  { %44 = vrot.lane.b32.xlu0 %v292_v0, %s261_s0  ;;  %40 = vperm.xlu1 %237, %v19_v8  }
   0xd   :  { %216 = vmatpush3.msra.mxu0 %v94_v16  ;;  %p245_p3 = por %p244_p2, %p243_p1 }
   0xe   :  { %217 = vmatprep.subr.mxu0 %v262_v9 }
   0xf   :  { %218 = vmatpush3.msra.mxu0 %v93_v20  ;;  %p246_p4 = pnand %p245_p3, %p239_p0 }
  0x7f   :  { %v23_v11 = vpop.permute.xlu0 %22 }
  0x80   :  { %v25_v13 = vmul.f32 %v23_v11, %v292_v0 }
  0x82   :  { %48 = vrot.lane.b32.xlu1 %v25_v13, %s263_s17 }
  0x83   :  { %v29_v15 = vpop.permute.xlu0 %28  ;;  %v35_v18 = vpop.permute.xlu1 %34 }
  0x84   :  { %v31_v17 = vmul.f32 %v29_v15, %v292_v0  ;;  %v37_v19 = vmul.f32 %v35_v18, %v292_v0 }
  0x86   :  { %52 = vrot.lane.b32.xlu0 %v31_v17, %s264_s22  ;;  %56 = vrot.lane.b32.xlu1 %v37_v19, %s265_s23 }
  0x87   :  { %v41_v21 = vpop.permute.xlu1 %40  ;;  %v45_v23 = vpop.permute.xlu0 %44 }
  0x88   :  { %v43_v22 = vmul.f32 %v41_v21, %v292_v0 }
  0x8a   :  { %60 = vrot.lane.b32.xlu0 %v43_v22, %s267_s24  ;;  %63 = vrot.lane.b32.xlu1 %v292_v0, %s268_s25 }
  0x8e   :  { %66 = vrot.lane.b32.xlu0 %v13_v4, %s269_s26  ;;  %69 = vrot.lane.b32.xlu1 %v16_v7, %s270_s27 }
  0x92   :  { %72 = vrot.lane.b32.xlu0 %v19_v8, %s271_s1 }
  0xf4   :  { %v49_v24 = vpop.permute.xlu1 %48 }
  0xf5   :  { %v76_v26 = vsel %vm75_vm2, %v45_v23, %v49_v24 }
  0xf8   :  { %v53_v25 = vpop.permute.xlu0 %52  ;;  %v57_v27 = vpop.permute.xlu1 %56 }
  0xf9   :  { %v78_v28 = vsel %vm77_vm3, %v76_v26, %v53_v25 }
  0xfa   :  { %v80_v29 = vsel %vm79_vm4, %v78_v28, %v57_v27 }
  0xfc   :  { %v61_v30 = vpop.permute.xlu0 %60  ;;  %v64_v31 = vpop.permute.xlu1 %63 }
  0xfd   :  { %v82_v32 = vsel %vm81_vm5, %v80_v29, %v61_v30 }
  0xfe   :  { %v84_v33 = vsel %vm83_vm6, %v82_v32, 1.0 }
  0xff   :  { %v86_v34 = vsel %vm85_vm7, %v84_v33, %v64_v31 }
 0x100   :  { %v67_v35 = vpop.permute.xlu0 %66  ;;  %v70_v37 = vpop.permute.xlu1 %69 }
 0x101   :  { %v88_v36 = vsel %vm87_vm8, %v86_v34, %v67_v35 }
 0x102   :  { %v90_v38 = vsel %vm89_vm9, %v88_v36, %v70_v37 }
 0x104   :  { %v73_v39 = vpop.permute.xlu0 %72 }
 0x105   :  { %v92_v40 = vsel %vm91_vm10, %v90_v38, %v73_v39 }
 0x106   :  { %220 = vmatmul.mubr.msk.f32.vlgmr.msra.gmra.mxu0 %vm98_vm11, %v92_v40 }
 0x1c6   :  { %v172_v41 = vpop.f32.mrf.mxu0 }
 0x1c7   :  { %v176_v42 = vmax.f32 %v172_v41, 0.0 }
 0x1c8   :  { %v221_v43 = vpop.f32.mrf.mxu0 }
 0x1c9   :  { %178 = vrot.lane.b32.xlu1 %v176_v42, %s272_s28 }
 0x23b   :  { %v179_v44 = vpop.permute.xlu1 %178 }
 0x23c   :  { %v182_v45 = vsel %vm181_vm12, %v292_v0, %v179_v44 }
 0x23d   :  { %184 = vst.msk [vmem:[#allocation2] sm:$0xff] %vm183_vm13, %v182_v45 }
 0x23e   :  { %249 = shalt.err (!%p246_p4)
}
 0x23f   :  { %194 = dma.vmem_to_hbm [thread:$0]  %s192_s30, 128, %s326_s2, [#allocation3]  }
 0x240   :  { %258 = dma.done.wait [#allocation3], 128  }
 0x241   :  { %259 = vsyncadd [#allocation3], 4294967168 }
 0x242   :  { %198 = vsyncpa [#allocation3], 1 }

</bundles_post_ra>
